<compile_context>
chip_gen: v5e
topology: v5e:2x2
jax: 0.10.0
libtpu: 0.0.40
codegen_flags: <defaults>
</compile_context>

<pallas_src>
import functools

import jax
import jax.numpy as jnp
from jax import lax
from jax.experimental import pallas as pl
from jax.experimental.pallas import tpu as pltpu

EPS = 1e-5  # nn.LayerNorm default eps


def _round_up(x: int, m: int) -> int:
    return (x + m - 1) // m * m


def _physical_vmem_bytes() -> int:
    """Per-TensorCore VMEM capacity; conservative fallback if the query fails."""
    try:
        info = pltpu.get_tpu_info()
        v = getattr(info, "vmem_capacity_bytes", None)
        if v:
            return int(v)
    except Exception:
        pass
    return 64 * 1024 * 1024  # v7x per-TC VMEM (smallest current generation)


def _pick_tk(F: int, phys_vmem: int) -> int:
    """K-tile for the (F, F) residual weight.

    Keep wr fully VMEM-resident (TK = F, fetched once for the whole grid)
    unless its bf16 footprint exceeds ~25% of physical VMEM; then stream it in
    (TK, F) blocks (re-fetched per batch tile)."""
    if 2 * F * F <= phys_vmem // 4:
        return F
    for tk in (512, 256, 128):
        if F % tk == 0:
            return tk
    return F  # odd F: keep resident rather than mis-tile


def _spec(shape, index_map, buffer_count=None):
    """BlockSpec, optionally single-buffered for VMEM-resident operands."""
    if buffer_count is not None and hasattr(pl, "Buffered"):
        try:
            return pl.BlockSpec(shape, index_map,
                                pipeline_mode=pl.Buffered(buffer_count))
        except TypeError:  # jax without BlockSpec.pipeline_mode
            pass
    return pl.BlockSpec(shape, index_map)


# Row layout of the packed (8, F) resident vector operand.
_LN1_G, _LN1_B, _B2, _BR, _LN2_G, _LN2_B = range(6)


def _agm_kernel(shared_ref, task_ref, vecs_ref, w1_ref, b1_ref, w2_ref, wr_ref,
                out_ref, gated_sc, racc_sc, *, num_k: int, tk: int):
    k = pl.program_id(1)

    # ---- attention branch + gating: once per batch tile (k == 0) -----------
    @pl.when(k == 0)
    def _attention_and_gate():
        x = shared_ref[...].astype(jnp.float32)   # (TB, F) shared features
        t = task_ref[...].astype(jnp.float32)     # (TB, F) task features

        # LayerNorm(feature_dim), two-pass variance (matches PyTorch; no
        # E[x^2]-mu^2 cancellation).
        mu = jnp.mean(x, axis=-1, keepdims=True)
        d = x - mu
        var = jnp.mean(d * d, axis=-1, keepdims=True)
        xn = d * lax.rsqrt(var + EPS)
        xn = xn * vecs_ref[_LN1_G:_LN1_G + 1, :] + vecs_ref[_LN1_B:_LN1_B + 1, :]

        # Linear(F -> F//2): bf16 operands into the MXU, f32 accumulation.
        h = jnp.dot(xn.astype(jnp.bfloat16), w1_ref[...],
                    preferred_element_type=jnp.float32) + b1_ref[...]
        # GELU (exact erf form = nn.GELU default).
        h = 0.5 * h * (1.0 + lax.erf(h * (1.0 / jnp.sqrt(2.0))))
        # Dropout(0.2): identity in eval mode.
        # TODO(synk): training-mode stochastic dropout (pltpu.prng_*) not emitted.

        # Linear(F//2 -> F) + Sigmoid.
        a = jnp.dot(h.astype(jnp.bfloat16), w2_ref[...],
                    preferred_element_type=jnp.float32) + vecs_ref[_B2:_B2 + 1, :]
        attn = jax.nn.sigmoid(a)

        # gated = x*attn + t*(1-attn), written with one fewer VALU op.
        gated = t + attn * (x - t)

        # Stash gated K-chunked so each k step indexes chunk [k] along the
        # (well-supported) leading scratch axis — no dynamic lane slicing.
        if num_k == 1:
            gated_sc[0] = gated
        else:
            for kk in range(num_k):                       # static unroll
                gated_sc[kk] = gated[:, kk * tk:(kk + 1) * tk]
        racc_sc[...] = jnp.zeros_like(racc_sc)

    # ---- residual matmul, K-tiled: r += gated[:, k*TK:(k+1)*TK] @ wr_k ------
    racc_sc[...] += jnp.dot(gated_sc[k].astype(jnp.bfloat16), wr_ref[...],
                            preferred_element_type=jnp.float32)

    # ---- finalize: bias + LayerNorm2 + residual add (k == last) -------------
    @pl.when(k == num_k - 1)
    def _finalize():
        r = racc_sc[...] + vecs_ref[_BR:_BR + 1, :]
        mu2 = jnp.mean(r, axis=-1, keepdims=True)
        d2 = r - mu2
        var2 = jnp.mean(d2 * d2, axis=-1, keepdims=True)
        rn = d2 * lax.rsqrt(var2 + EPS)
        rn = rn * vecs_ref[_LN2_G:_LN2_G + 1, :] + vecs_ref[_LN2_B:_LN2_B + 1, :]
        if num_k == 1:
            out_ref[...] = (gated_sc[0] + rn).astype(out_ref.dtype)
        else:
            for kk in range(num_k):                       # static, aligned slices
                sl = slice(kk * tk, (kk + 1) * tk)
                out_ref[:, sl] = (gated_sc[kk] + rn[:, sl]).astype(out_ref.dtype)


@functools.partial(jax.jit, static_argnames=("block_b", "force_tk"))
def attention_gating_forward(shared, task, params, *, block_b: int = 512,
                             force_tk=None):
    """shared, task: (B, F) float32.  Returns (B, F) float32."""
    B, F = shared.shape
    H = params["w1"].shape[1]

    # ---- generation-aware VMEM budget ---------------------------------------
    phys_vmem = _physical_vmem_bytes()
    budget = phys_vmem - (4 << 20)                 # headroom below physical VMEM

    tk = force_tk if force_tk is not None else _pick_tk(F, phys_vmem)
    assert F % tk == 0, (F, tk)
    num_k = F // tk

    # VMEM accounting drives TB and vmem_limit.
    resident_bytes = 2 * (F * H + H * F)           # w1 + w2 (bf16, single-buffered)
    resident_bytes += (8 * F + H) * 4              # packed vecs + b1 (f32)
    if num_k == 1:
        resident_bytes += 2 * F * F                # wr resident (bf16)
        wr_stream_bytes = 0
    else:
        wr_stream_bytes = 2 * (tk * F * 2)         # wr streamed, double-buffered
    # shared/task/out double-buffered f32 + gated/racc f32 scratch, per TB row:
    per_row_bytes = 32 * F

    tb_cap = (budget - resident_bytes - wr_stream_bytes) // per_row_bytes
    tb_cap = max(8, (tb_cap // 8) * 8)

    TB = min(block_b, tb_cap, _round_up(B, 8))
    TB = max(8, (TB // 8) * 8)
    # Guarantee >= 2 batch tiles when B permits, so the "parallel" axis really
    # splits across v7x's two TensorCores (no effect on v5e/v6e).
    if B >= 16 and _round_up(B, TB) // TB < 2:
        TB = max(8, _round_up((B + 1) // 2, 8))
    B_pad = _round_up(B, TB)
    num_tiles = B_pad // TB

    if B_pad != B:
        pad = ((0, B_pad - B), (0, 0))
        shared_p = jnp.pad(shared, pad)
        task_p = jnp.pad(task, pad)
    else:
        shared_p, task_p = shared, task

    # bf16 weights feed the MXU at native rate; f32 accumulation in-kernel.
    w1 = params["w1"].astype(jnp.bfloat16)
    w2 = params["w2"].astype(jnp.bfloat16)
    wr = params["wr"].astype(jnp.bfloat16)

    # Pack six F-length vectors into one (8, F) resident operand (one DMA; the
    # (1, F) rows were padded to 8 sublanes anyway).
    vecs = jnp.concatenate(
        [params["ln1_g"], params["ln1_b"], params["b2"], params["br"],
         params["ln2_g"], params["ln2_b"], jnp.zeros((2, F), jnp.float32)],
        axis=0)

    act_spec = pl.BlockSpec((TB, F), lambda i, k: (i, 0))
    if num_k == 1:
        wr_spec = _spec((F, F), lambda i, k: (0, 0), buffer_count=1)
    else:
        wr_spec = pl.BlockSpec((tk, F), lambda i, k: (k, 0))   # streamed

    in_specs = [
        act_spec,                                      # shared
        act_spec,                                      # task
        _spec((8, F), lambda i, k: (0, 0), 1),         # packed LN/bias vectors
        _spec((F, H), lambda i, k: (0, 0), 1),         # w1 (bf16)
        _spec((1, H), lambda i, k: (0, 0), 1),         # b1
        _spec((H, F), lambda i, k: (0, 0), 1),         # w2 (bf16)
        wr_spec,                                       # wr (bf16)
    ]
    # NOTE: realistic F should be a multiple of 128 for unmasked lane stores;
    # small F (e.g. the 32-lane demo) is correct but hits masked partial stores.

    est_bytes = resident_bytes + wr_stream_bytes + per_row_bytes * TB
    vmem_limit = int(max(32 << 20, min(budget, est_bytes + (8 << 20))))

    cost = pl.CostEstimate(
        flops=2 * B_pad * (2 * F * H + F * F),
        transcendentals=B_pad * (H + F),
        bytes_accessed=3 * B_pad * F * 4 + 2 * (2 * F * H + F * F) + (8 * F + H) * 4,
    )

    kernel = functools.partial(_agm_kernel, num_k=num_k, tk=tk)

    out_padded = pl.pallas_call(
        kernel,
        out_shape=jax.ShapeDtypeStruct((B_pad, F), shared.dtype),
        grid=(num_tiles, num_k),
        in_specs=in_specs,
        out_specs=pl.BlockSpec((TB, F), lambda i, k: (i, 0)),
        scratch_shapes=[
            pltpu.VMEM((num_k, TB, tk), jnp.float32),  # gated, K-chunked
            pltpu.VMEM((TB, F), jnp.float32),          # residual accumulator
        ],
        compiler_params=pltpu.CompilerParams(
            dimension_semantics=("parallel", "arbitrary"),
            vmem_limit_bytes=vmem_limit),
        cost_estimate=cost,
    )(shared_p, task_p, vecs, w1, params["b1"], w2, wr)

    return out_padded[:B]


def _reference(shared, task, p, matmul_dtype=jnp.float32):
    """Pure-JAX reference mirroring the PyTorch forward (eval mode)."""
    def ln(x, g, b):
        mu = jnp.mean(x, axis=-1, keepdims=True)
        var = jnp.mean((x - mu) ** 2, axis=-1, keepdims=True)
        return (x - mu) / jnp.sqrt(var + EPS) * g + b

    def mm(a, w):
        return jnp.dot(a.astype(matmul_dtype), w.astype(matmul_dtype),
                       preferred_element_type=jnp.float32)

    xn = ln(shared, p["ln1_g"], p["ln1_b"])
    h = mm(xn, p["w1"]) + p["b1"]
    h = jax.nn.gelu(h, approximate=False)
    a = mm(h, p["w2"]) + p["b2"]
    attn = jax.nn.sigmoid(a)
    gated = shared * attn + task * (1.0 - attn)
    r = ln(mm(gated, p["wr"]) + p["br"], p["ln2_g"], p["ln2_b"])
    return gated + r


def make_params(key, feature_dim):
    H = feature_dim // 2
    ks = jax.random.split(key, 6)
    scale1 = 1.0 / jnp.sqrt(feature_dim)
    scale2 = 1.0 / jnp.sqrt(H)
    return {
        "ln1_g": jnp.ones((1, feature_dim), jnp.float32),
        "ln1_b": jnp.zeros((1, feature_dim), jnp.float32),
        # weights stored as (in, out) so the kernel does x @ W
        "w1": jax.random.normal(ks[0], (feature_dim, H), jnp.float32) * scale1,
        "b1": jax.random.normal(ks[1], (1, H), jnp.float32) * 0.01,
        "w2": jax.random.normal(ks[2], (H, feature_dim), jnp.float32) * scale2,
        "b2": jax.random.normal(ks[3], (1, feature_dim), jnp.float32) * 0.01,
        "wr": jax.random.normal(ks[4], (feature_dim, feature_dim), jnp.float32) * scale1,
        "br": jax.random.normal(ks[5], (1, feature_dim), jnp.float32) * 0.01,
        "ln2_g": jnp.ones((1, feature_dim), jnp.float32),
        "ln2_b": jnp.zeros((1, feature_dim), jnp.float32),
    }


if __name__ == "__main__":
    key = jax.random.PRNGKey(0)

    # ---- Case 1: small shapes consistent with the module --------------------
    B, F = 8, 32  # batch, feature_dim (hidden = F // 2 = 16)
    k_sh, k_ts, k_p, k_rest = jax.random.split(key, 4)
    shared = jax.random.normal(k_sh, (B, F), jnp.float32)
    task = jax.random.normal(k_ts, (B, F), jnp.float32)
    params = make_params(k_p, F)

    out = jax.block_until_ready(attention_gating_forward(shared, task, params))
    assert out.shape == (B, F)
    ref_bf16 = _reference(shared, task, params, matmul_dtype=jnp.bfloat16)
    ref_f32 = _reference(shared, task, params, matmul_dtype=jnp.float32)
    assert jnp.allclose(out, ref_bf16, atol=3e-2, rtol=3e-2), \
        "mismatch vs bf16-matmul reference"
    assert float(jnp.max(jnp.abs(out - ref_f32))) < 0.1, \
        "drift vs pure-f32 reference too large"

    # ---- Case 2: multi batch-tile grid + padding + megacore split -----------
    B2, F2 = 200, 128  # TB=64 -> padded to 256 rows, grid=(4, 1)
    k_sh2, k_ts2, k_p2, k_rest2 = jax.random.split(k_rest, 4)
    shared2 = jax.random.normal(k_sh2, (B2, F2), jnp.float32)
    task2 = jax.random.normal(k_ts2, (B2, F2), jnp.float32)
    params2 = make_params(k_p2, F2)
    out2 = jax.block_until_ready(
        attention_gating_forward(shared2, task2, params2, block_b=64))
    assert out2.shape == (B2, F2)
    ref2 = _reference(shared2, task2, params2, matmul_dtype=jnp.bfloat16)
    assert jnp.allclose(out2, ref2, atol=3e-2, rtol=3e-2), \
        "mismatch vs bf16-matmul reference (tiled case)"

    # ---- Case 3: exercise the K-tiled residual-weight path (v7x large-F) ----
    B3, F3 = 64, 256  # force_tk=128 -> grid (2, 2) with wr streamed in K tiles
    k_sh3, k_ts3, k_p3 = jax.random.split(k_rest2, 3)
    shared3 = jax.random.normal(k_sh3, (B3, F3), jnp.float32)
    task3 = jax.random.normal(k_ts3, (B3, F3), jnp.float32)
    params3 = make_params(k_p3, F3)
    out3 = jax.block_until_ready(
        attention_gating_forward(shared3, task3, params3, block_b=32, force_tk=128))
    assert out3.shape == (B3, F3)
    ref3 = _reference(shared3, task3, params3, matmul_dtype=jnp.bfloat16)
    assert jnp.allclose(out3, ref3, atol=3e-2, rtol=3e-2), \
        "mismatch vs bf16-matmul reference (K-tiled case)"

    print("KERNEL_OK")
</pallas_src>

<mosaic_0001>
module attributes {stable_mosaic.version = 11 : i64} {
  func.func @_agm_kernel(%arg0: i32, %arg1: i32, %arg2: memref<8x32xf32, #tpu.memory_space<vmem>>, %arg3: memref<8x32xf32, #tpu.memory_space<vmem>>, %arg4: memref<8x32xf32, #tpu.memory_space<vmem>>, %arg5: memref<32x16xbf16, #tpu.memory_space<vmem>>, %arg6: memref<1x16xf32, #tpu.memory_space<vmem>>, %arg7: memref<16x32xbf16, #tpu.memory_space<vmem>>, %arg8: memref<32x32xbf16, #tpu.memory_space<vmem>>, %arg9: memref<8x32xf32, #tpu.memory_space<vmem>>, %arg10: memref<1x8x32xf32, #tpu.memory_space<vmem>>, %arg11: memref<8x32xf32, #tpu.memory_space<vmem>>) attributes {dimension_semantics = [#tpu.dimension_semantics<parallel>, #tpu.dimension_semantics<arbitrary>], iteration_bounds = array<i64: 1, 1>, scalar_prefetch = 0 : i64, scratch_operands = 2 : i64, tpu.core_type = #tpu.core_type<tc>, window_params = [{transform_indices = @transform_0, window_bounds = array<i64: 8, 32>}, {transform_indices = @transform_1, window_bounds = array<i64: 8, 32>}, {pipeline_mode = #tpu.pipeline_mode<synchronous>, transform_indices = @transform_2, window_bounds = array<i64: 8, 32>}, {pipeline_mode = #tpu.pipeline_mode<synchronous>, transform_indices = @transform_3, window_bounds = array<i64: 32, 16>}, {pipeline_mode = #tpu.pipeline_mode<synchronous>, transform_indices = @transform_4, window_bounds = array<i64: 1, 16>}, {pipeline_mode = #tpu.pipeline_mode<synchronous>, transform_indices = @transform_5, window_bounds = array<i64: 16, 32>}, {pipeline_mode = #tpu.pipeline_mode<synchronous>, transform_indices = @transform_6, window_bounds = array<i64: 32, 32>}, {transform_indices = @transform_7, window_bounds = array<i64: 8, 32>}]} {
    %c0_i32 = arith.constant 0 : i32
    %0 = arith.cmpi eq, %arg1, %c0_i32 : i32
    %1 = arith.extui %0 : i1 to i32
    %c0_i32_0 = arith.constant 0 : i32
    %2 = arith.cmpi ne, %1, %c0_i32_0 : i32
    scf.if %2 {
      %c0_10 = arith.constant 0 : index
      %c0_11 = arith.constant 0 : index
      %15 = vector.load %arg2[%c0_10, %c0_11] : memref<8x32xf32, #tpu.memory_space<vmem>>, vector<8x32xf32>
      %c0_12 = arith.constant 0 : index
      %c0_13 = arith.constant 0 : index
      %16 = vector.load %arg3[%c0_12, %c0_13] : memref<8x32xf32, #tpu.memory_space<vmem>>, vector<8x32xf32>
      %cst_14 = arith.constant dense<0.000000e+00> : vector<8xf32>
      %17 = vector.multi_reduction <add>, %15, %cst_14 [1] : vector<8x32xf32> to vector<8xf32>
      %18 = vector.shape_cast %17 : vector<8xf32> to vector<8x1xf32>
      %cst_15 = arith.constant 3.200000e+01 : f32
      %19 = vector.broadcast %cst_15 : f32 to vector<8x1xf32>
      %20 = arith.divf %18, %19 : vector<8x1xf32>
      %21 = vector.broadcast %20 : vector<8x1xf32> to vector<8x32xf32>
      %22 = arith.subf %15, %21 : vector<8x32xf32>
      %23 = arith.mulf %22, %22 : vector<8x32xf32>
      %cst_16 = arith.constant dense<0.000000e+00> : vector<8xf32>
      %24 = vector.multi_reduction <add>, %23, %cst_16 [1] : vector<8x32xf32> to vector<8xf32>
      %25 = vector.shape_cast %24 : vector<8xf32> to vector<8x1xf32>
      %cst_17 = arith.constant 3.200000e+01 : f32
      %26 = vector.broadcast %cst_17 : f32 to vector<8x1xf32>
      %27 = arith.divf %25, %26 : vector<8x1xf32>
      %cst_18 = arith.constant 9.99999974E-6 : f32
      %28 = vector.broadcast %cst_18 : f32 to vector<8x1xf32>
      %29 = arith.addf %27, %28 : vector<8x1xf32>
      %30 = math.rsqrt %29 : vector<8x1xf32>
      %31 = vector.broadcast %30 : vector<8x1xf32> to vector<8x32xf32>
      %32 = arith.mulf %22, %31 : vector<8x32xf32>
      %c0_19 = arith.constant 0 : index
      %c0_20 = arith.constant 0 : index
      %33 = vector.load %arg4[%c0_19, %c0_20] : memref<8x32xf32, #tpu.memory_space<vmem>>, vector<1x32xf32>
      %34 = vector.broadcast %33 : vector<1x32xf32> to vector<8x32xf32>
      %35 = arith.mulf %32, %34 : vector<8x32xf32>
      %c1 = arith.constant 1 : index
      %c0_21 = arith.constant 0 : index
      %36 = vector.load %arg4[%c1, %c0_21] : memref<8x32xf32, #tpu.memory_space<vmem>>, vector<1x32xf32>
      %37 = vector.broadcast %36 : vector<1x32xf32> to vector<8x32xf32>
      %38 = arith.addf %35, %37 : vector<8x32xf32>
      %39 = arith.truncf %38 : vector<8x32xf32> to vector<8x32xbf16>
      %c0_22 = arith.constant 0 : index
      %c0_23 = arith.constant 0 : index
      %40 = vector.load %arg5[%c0_22, %c0_23] : memref<32x16xbf16, #tpu.memory_space<vmem>>, vector<32x16xbf16>
      %cst_24 = arith.constant dense<0.000000e+00> : vector<8x16xf32>
      %41 = tpu.matmul %39, %40, %cst_24 {dimension_numbers = #tpu.dot_dimension_numbers<[1], [0], [0], [1], [0, 0, 1, 1], [], []>} : vector<8x32xbf16>, vector<32x16xbf16>, vector<8x16xf32> -> vector<8x16xf32>
      %c0_25 = arith.constant 0 : index
      %c0_26 = arith.constant 0 : index
      %42 = vector.load %arg6[%c0_25, %c0_26] : memref<1x16xf32, #tpu.memory_space<vmem>>, vector<1x16xf32>
      %43 = vector.broadcast %42 : vector<1x16xf32> to vector<8x16xf32>
      %44 = arith.addf %41, %43 : vector<8x16xf32>
      %cst_27 = arith.constant 5.000000e-01 : f32
      %45 = vector.broadcast %cst_27 : f32 to vector<8x16xf32>
      %46 = arith.mulf %45, %44 : vector<8x16xf32>
      %cst_28 = arith.constant 2.000000e+00 : f32
      %47 = math.sqrt %cst_28 : f32
      %cst_29 = arith.constant 1.000000e+00 : f32
      %48 = arith.divf %cst_29, %47 : f32
      %49 = vector.broadcast %48 : f32 to vector<8x16xf32>
      %50 = arith.mulf %44, %49 : vector<8x16xf32>
      %51 = math.erf %50 : vector<8x16xf32>
      %cst_30 = arith.constant 1.000000e+00 : f32
      %52 = vector.broadcast %cst_30 : f32 to vector<8x16xf32>
      %53 = arith.addf %52, %51 : vector<8x16xf32>
      %54 = arith.mulf %46, %53 : vector<8x16xf32>
      %55 = arith.truncf %54 : vector<8x16xf32> to vector<8x16xbf16>
      %c0_31 = arith.constant 0 : index
      %c0_32 = arith.constant 0 : index
      %56 = vector.load %arg7[%c0_31, %c0_32] : memref<16x32xbf16, #tpu.memory_space<vmem>>, vector<16x32xbf16>
      %cst_33 = arith.constant dense<0.000000e+00> : vector<8x32xf32>
      %57 = tpu.matmul %55, %56, %cst_33 {dimension_numbers = #tpu.dot_dimension_numbers<[1], [0], [0], [1], [0, 0, 1, 1], [], []>} : vector<8x16xbf16>, vector<16x32xbf16>, vector<8x32xf32> -> vector<8x32xf32>
      %c2 = arith.constant 2 : index
      %c0_34 = arith.constant 0 : index
      %58 = vector.load %arg4[%c2, %c0_34] : memref<8x32xf32, #tpu.memory_space<vmem>>, vector<1x32xf32>
      %59 = vector.broadcast %58 : vector<1x32xf32> to vector<8x32xf32>
      %60 = arith.addf %57, %59 : vector<8x32xf32>
      %61 = arith.negf %60 : vector<8x32xf32>
      %62 = math.exp %61 : vector<8x32xf32>
      %cst_35 = arith.constant 1.000000e+00 : f32
      %63 = vector.broadcast %cst_35 : f32 to vector<8x32xf32>
      %64 = arith.addf %63, %62 : vector<8x32xf32>
      %65 = arith.divf %63, %64 : vector<8x32xf32>
      %66 = arith.subf %15, %16 : vector<8x32xf32>
      %67 = arith.mulf %65, %66 : vector<8x32xf32>
      %68 = arith.addf %16, %67 : vector<8x32xf32>
      %c0_36 = arith.constant 0 : index
      %c0_37 = arith.constant 0 : index
      %c0_38 = arith.constant 0 : index
      %69 = vector.load %arg10[%c0_36, %c0_37, %c0_38] : memref<1x8x32xf32, #tpu.memory_space<vmem>>, vector<1x8x32xf32>
      %70 = vector.shape_cast %69 : vector<1x8x32xf32> to vector<8x32xf32>
      %71 = vector.shape_cast %68 : vector<8x32xf32> to vector<1x8x32xf32>
      tpu.vector_store %arg10[%c0_36, %c0_37, %c0_38], %71 {strides = array<i32>} : memref<1x8x32xf32, #tpu.memory_space<vmem>>, vector<1x8x32xf32>,
      %cst_39 = arith.constant 0.000000e+00 : f32
      %72 = vector.broadcast %cst_39 : f32 to vector<8x32xf32>
      %c0_40 = arith.constant 0 : index
      %c0_41 = arith.constant 0 : index
      %73 = vector.load %arg11[%c0_40, %c0_41] : memref<8x32xf32, #tpu.memory_space<vmem>>, vector<8x32xf32>
      tpu.vector_store %arg11[%c0_40, %c0_41], %72 {strides = array<i32>} : memref<8x32xf32, #tpu.memory_space<vmem>>, vector<8x32xf32>,
    } else {
    }
    %c0 = arith.constant 0 : index
    %c0_1 = arith.constant 0 : index
    %3 = vector.load %arg11[%c0, %c0_1] : memref<8x32xf32, #tpu.memory_space<vmem>>, vector<8x32xf32>
    %4 = arith.index_cast %arg1 : i32 to index
    %c0_2 = arith.constant 0 : index
    %c0_3 = arith.constant 0 : index
    %5 = vector.load %arg10[%4, %c0_2, %c0_3] : memref<1x8x32xf32, #tpu.memory_space<vmem>>, vector<1x8x32xf32>
    %6 = vector.shape_cast %5 : vector<1x8x32xf32> to vector<8x32xf32>
    %7 = arith.truncf %6 : vector<8x32xf32> to vector<8x32xbf16>
    %c0_4 = arith.constant 0 : index
    %c0_5 = arith.constant 0 : index
    %8 = vector.load %arg8[%c0_4, %c0_5] : memref<32x32xbf16, #tpu.memory_space<vmem>>, vector<32x32xbf16>
    %cst = arith.constant dense<0.000000e+00> : vector<8x32xf32>
    %9 = tpu.matmul %7, %8, %cst {dimension_numbers = #tpu.dot_dimension_numbers<[1], [0], [0], [1], [0, 0, 1, 1], [], []>} : vector<8x32xbf16>, vector<32x32xbf16>, vector<8x32xf32> -> vector<8x32xf32>
    %10 = arith.addf %3, %9 : vector<8x32xf32>
    %c0_6 = arith.constant 0 : index
    %c0_7 = arith.constant 0 : index
    %11 = vector.load %arg11[%c0_6, %c0_7] : memref<8x32xf32, #tpu.memory_space<vmem>>, vector<8x32xf32>
    tpu.vector_store %arg11[%c0_6, %c0_7], %10 {strides = array<i32>} : memref<8x32xf32, #tpu.memory_space<vmem>>, vector<8x32xf32>,
    %c0_i32_8 = arith.constant 0 : i32
    %12 = arith.cmpi eq, %arg1, %c0_i32_8 : i32
    %13 = arith.extui %12 : i1 to i32
    %c0_i32_9 = arith.constant 0 : i32
    %14 = arith.cmpi ne, %13, %c0_i32_9 : i32
    scf.if %14 {
      %c0_10 = arith.constant 0 : index
      %c0_11 = arith.constant 0 : index
      %15 = vector.load %arg11[%c0_10, %c0_11] : memref<8x32xf32, #tpu.memory_space<vmem>>, vector<8x32xf32>
      %c3 = arith.constant 3 : index
      %c0_12 = arith.constant 0 : index
      %16 = vector.load %arg4[%c3, %c0_12] : memref<8x32xf32, #tpu.memory_space<vmem>>, vector<1x32xf32>
      %17 = vector.broadcast %16 : vector<1x32xf32> to vector<8x32xf32>
      %18 = arith.addf %15, %17 : vector<8x32xf32>
      %cst_13 = arith.constant dense<0.000000e+00> : vector<8xf32>
      %19 = vector.multi_reduction <add>, %18, %cst_13 [1] : vector<8x32xf32> to vector<8xf32>
      %20 = vector.shape_cast %19 : vector<8xf32> to vector<8x1xf32>
      %cst_14 = arith.constant 3.200000e+01 : f32
      %21 = vector.broadcast %cst_14 : f32 to vector<8x1xf32>
      %22 = arith.divf %20, %21 : vector<8x1xf32>
      %23 = vector.broadcast %22 : vector<8x1xf32> to vector<8x32xf32>
      %24 = arith.subf %18, %23 : vector<8x32xf32>
      %25 = arith.mulf %24, %24 : vector<8x32xf32>
      %cst_15 = arith.constant dense<0.000000e+00> : vector<8xf32>
      %26 = vector.multi_reduction <add>, %25, %cst_15 [1] : vector<8x32xf32> to vector<8xf32>
      %27 = vector.shape_cast %26 : vector<8xf32> to vector<8x1xf32>
      %cst_16 = arith.constant 3.200000e+01 : f32
      %28 = vector.broadcast %cst_16 : f32 to vector<8x1xf32>
      %29 = arith.divf %27, %28 : vector<8x1xf32>
      %cst_17 = arith.constant 9.99999974E-6 : f32
      %30 = vector.broadcast %cst_17 : f32 to vector<8x1xf32>
      %31 = arith.addf %29, %30 : vector<8x1xf32>
      %32 = math.rsqrt %31 : vector<8x1xf32>
      %33 = vector.broadcast %32 : vector<8x1xf32> to vector<8x32xf32>
      %34 = arith.mulf %24, %33 : vector<8x32xf32>
      %c4 = arith.constant 4 : index
      %c0_18 = arith.constant 0 : index
      %35 = vector.load %arg4[%c4, %c0_18] : memref<8x32xf32, #tpu.memory_space<vmem>>, vector<1x32xf32>
      %36 = vector.broadcast %35 : vector<1x32xf32> to vector<8x32xf32>
      %37 = arith.mulf %34, %36 : vector<8x32xf32>
      %c5 = arith.constant 5 : index
      %c0_19 = arith.constant 0 : index
      %38 = vector.load %arg4[%c5, %c0_19] : memref<8x32xf32, #tpu.memory_space<vmem>>, vector<1x32xf32>
      %39 = vector.broadcast %38 : vector<1x32xf32> to vector<8x32xf32>
      %40 = arith.addf %37, %39 : vector<8x32xf32>
      %c0_20 = arith.constant 0 : index
      %c0_21 = arith.constant 0 : index
      %c0_22 = arith.constant 0 : index
      %41 = vector.load %arg10[%c0_20, %c0_21, %c0_22] : memref<1x8x32xf32, #tpu.memory_space<vmem>>, vector<1x8x32xf32>
      %42 = vector.shape_cast %41 : vector<1x8x32xf32> to vector<8x32xf32>
      %43 = arith.addf %42, %40 : vector<8x32xf32>
      %c0_23 = arith.constant 0 : index
      %c0_24 = arith.constant 0 : index
      %44 = vector.load %arg9[%c0_23, %c0_24] : memref<8x32xf32, #tpu.memory_space<vmem>>, vector<8x32xf32>
      tpu.vector_store %arg9[%c0_23, %c0_24], %43 {strides = array<i32>} : memref<8x32xf32, #tpu.memory_space<vmem>>, vector<8x32xf32>,
    } else {
    }
    return
  }
  func.func @transform_0(%arg0: i32, %arg1: i32) -> (i32, i32) {
    %c0_i32 = arith.constant 0 : i32
    %c0_i32_0 = arith.constant 0 : i32
    return %arg0, %c0_i32 : i32, i32
  }
  func.func @transform_1(%arg0: i32, %arg1: i32) -> (i32, i32) {
    %c0_i32 = arith.constant 0 : i32
    %c0_i32_0 = arith.constant 0 : i32
    return %arg0, %c0_i32 : i32, i32
  }
  func.func @transform_2(%arg0: i32, %arg1: i32) -> (i32, i32) {
    %c0_i32 = arith.constant 0 : i32
    %c0_i32_0 = arith.constant 0 : i32
    %c0_i32_1 = arith.constant 0 : i32
    return %c0_i32, %c0_i32_0 : i32, i32
  }
  func.func @transform_3(%arg0: i32, %arg1: i32) -> (i32, i32) {
    %c0_i32 = arith.constant 0 : i32
    %c0_i32_0 = arith.constant 0 : i32
    %c0_i32_1 = arith.constant 0 : i32
    return %c0_i32, %c0_i32_0 : i32, i32
  }
  func.func @transform_4(%arg0: i32, %arg1: i32) -> (i32, i32) {
    %c0_i32 = arith.constant 0 : i32
    %c0_i32_0 = arith.constant 0 : i32
    %c0_i32_1 = arith.constant 0 : i32
    return %c0_i32, %c0_i32_0 : i32, i32
  }
  func.func @transform_5(%arg0: i32, %arg1: i32) -> (i32, i32) {
    %c0_i32 = arith.constant 0 : i32
    %c0_i32_0 = arith.constant 0 : i32
    %c0_i32_1 = arith.constant 0 : i32
    return %c0_i32, %c0_i32_0 : i32, i32
  }
  func.func @transform_6(%arg0: i32, %arg1: i32) -> (i32, i32) {
    %c0_i32 = arith.constant 0 : i32
    %c0_i32_0 = arith.constant 0 : i32
    %c0_i32_1 = arith.constant 0 : i32
    return %c0_i32, %c0_i32_0 : i32, i32
  }
  func.func @transform_7(%arg0: i32, %arg1: i32) -> (i32, i32) {
    %c0_i32 = arith.constant 0 : i32
    %c0_i32_0 = arith.constant 0 : i32
    return %arg0, %c0_i32 : i32, i32
  }
}

</mosaic_0001>

<bundles_post_ra>
// kernel: attention_gating_forward.1
= control target key start
LH: loop header
LB: loop body
LE: loop exit
PB: predicated region body
PF: predicated region fallthrough
CT: control target
= control target key end

     0   :  { %vm34_vm0 = vcmask 261120   ;;  %s491_s0 = inlined_call_operand.vmem [shape: f32[8,32], index: 0, kind: input, shape index: {}]   ;;  %s492_s1 = inlined_call_operand.vmem [shape: f32[8,32], index: 1, kind: input, shape index: {}]   ;;  %s493_s2 = inlined_call_operand.vmem [shape: f32[8,32], index: 2, kind: input, shape index: {}]   ;;  %s494_s3 = inlined_call_operand.vmem [shape: bf16[32,16], index: 3, kind: input, shape index: {}]   ;;  %s495_s4 = inlined_call_operand.vmem [shape: f32[1,16], index: 4, kind: input, shape index: {}]   ;;  %s496_s5 = inlined_call_operand.vmem [shape: bf16[16,32], index: 5, kind: input, shape index: {}]   ;;  %s497_s6 = inlined_call_operand.vmem [shape: bf16[32,32], index: 6, kind: input, shape index: {}]   ;;  %s498_s7 = inlined_call_operand.hbm [shape: f32[8,32], index: 7, kind: output, shape index: {}]  }
   0x1   :  { %v428_v0 = vld [vmem:[%s491_s0] sm:$0xff] }
   0x2   :  { %v35_v1 = vsel %vm34_vm0, %v428_v0, 0.0 }
   0x3   :  { %36 = vadd.xlane.f32.xlu0 %v35_v1 }
   0x4   :  { %12 = vsyncpa [#allocation5], 0  ;;  %v382_v2 = vmov 32.0   ;;  %v330_v14 = vld [vmem:[%s494_s3 + $0x8] sm:$0xff]  ;;  %v329_v15 = vld [vmem:[%s494_s3] sm:$0xff]  ;;  %vm162_vm9 = vcmask 130048  }
   0x5   :  { %344 = vrcp.f32 %v382_v2  ;;  %100 = vmatpush.bf16.msra.mxu0 %v330_v14  ;;  %v337_v25 = vld [vmem:[%s493_s2] ss:$0 sm:$0xff]  ;;  %v338_v28 = vld [vmem:[%s493_s2 + $0x1] ss:$0 sm:$0xff]  ;;  %s384_s23 = smov [#allocation4]   ;;  %s295_s26 = sshll.u32 %s498_s7, 4  ;;  %s296_s26 = int_to_ptr.hbm [resolvable:$true] %s295_s26 }
   0x6   :  { %v339_v32 = vld [vmem:[%s495_s4] ss:$0 sm:$0xff]  ;;  %s293_s24 = sshll.u32 %s384_s23, 4  ;;  %s294_s24 = int_to_ptr.vmem [resolvable:$true] %s293_s24 }
   0x7   :  { %v331_v45 = vld [vmem:[%s496_s5] sm:$0xff] }
   0x8   :  { %173 = vmatpush.bf16.msra.mxu1 %v331_v45 }
   0x9   :  { %101 = vmatpush.bf16.msra.mxu0 %v329_v15  ;;  %v340_v15 = vld [vmem:[%s493_s2 + $0x2] ss:$0 sm:$0xff] }
   0xb   :  { %v345_v3 = vpop.eup %344 }
   0xc   :  { %v39_v4 = vmul.f32 32.0, %v345_v3  ;;  %vm43_vm1 = vweird.f32 %v345_v3 }
   0xe   :  { %v40_v5 = vsub.f32 1.0, %v39_v4 }
  0x10   :  { %v41_v6 = vmul.f32 %v345_v3, %v40_v5 }
  0x12   :  { %v42_v7 = vadd.f32 %v345_v3, %v41_v6 }
  0x14   :  { %v432_v8 = vsel %vm43_vm1, %v345_v3, %v42_v7 }
  0x76   :  { %v37_v9 = vpop.xlane.xlu0 %36 }
  0x77   :  { %v45_v10 = vmul.f32 %v432_v8, %v37_v9 }
  0x79   :  { %v46_v11 = vsub.f32 %v428_v0, %v45_v10 }
  0x7b   :  { %v47_v12 = vmul.f32 %v46_v11, %v46_v11 }
  0x7d   :  { %v48_v13 = vsel %vm34_vm0, %v47_v12, 0.0 }
  0x7e   :  { %49 = vadd.xlane.f32.xlu0 %v48_v13 }
  0xf1   :  { %v50_v16 = vpop.xlane.xlu0 %49 }
  0xf2   :  { %v51_v17 = vmul.f32 %v50_v16, %v432_v8 }
  0xf4   :  { %v52_v18 = vadd.f32 1e-05, %v51_v17 }
  0xf6   :  { %346 = vrsqrt.f32 %v52_v18  ;;  %vm59_vm3 = vweird.f32 %v52_v18 }
  0xfc   :  { %v347_v19 = vpop.eup %346 }
  0xfd   :  { %v54_v20 = vmul.f32 %v347_v19, %v52_v18  ;;  %vm60_vm2 = vweird.f32 %v347_v19 }
  0xfe   :  { %vm61_vm4 = vmor %vm59_vm3, %vm60_vm2 }
  0xff   :  { %v55_v21 = vmul.f32 %v347_v19, %v54_v20  ;;  %v332_v20 = vld [vmem:[%s497_s6] sm:$0xff] }
 0x101   :  { %v56_v22 = vmul.f32 0.5, %v55_v21 }
 0x103   :  { %v57_v23 = vsub.f32 1.5, %v56_v22 }
 0x105   :  { %v58_v24 = vmul.f32 %v347_v19, %v57_v23 }
 0x107   :  { %v62_v26 = vsel %vm61_vm4, %v347_v19, %v58_v24  ;;  %v333_v19 = vld [vmem:[%s497_s6 + $0x8] sm:$0xff]  ;;  %v383_v24 = vmov 0.0  }
 0x108   :  { %v63_v27 = vmul.f32 %v62_v26, %v46_v11  ;;  %234 = vmatpush.bf16.msra.mxu2 %v333_v19  ;;  %202 = vst.msk [vmem:[#allocation3] sm:$0xff] %vm34_vm0, %v383_v24 }
 0x10a   :  { %v66_v29 = vmul.f32 %v337_v25, %v63_v27 }
 0x10c   :  { %v69_v30 = vadd.f32 %v338_v28, %v66_v29  ;;  %235 = vmatpush.bf16.msra.mxu2 %v332_v20  ;;  %v33_v28 = vld [vmem:[%s492_s1] sm:$0xff] }
 0x10e   :  { %v70_v31 = vpack.c.bf16 %v69_v30, %v69_v30 }
 0x110   :  { %312 = vmatmul.msk.bf16.vlgmr.msra.gmra.mxu0 %vm34_vm0, %v70_v31 }
 0x18d   :  { %v103_v33 = vpop.f32.mrf.mxu0 }
 0x18e   :  { %v104_v34 = vadd.f32 %v339_v32, %v103_v33  ;;  %v198_v32 = vsub.f32 %v428_v0, %v33_v28  ;;  %v341_v0 = vld [vmem:[%s493_s2 + $0x3] ss:$0 sm:$0xff] }
 0x190   :  { %v108_v35 = vmul.f32 0.70710677, %v104_v34  ;;  %v107_v11 = vmul.f32 0.5, %v104_v34 }
 0x192   :  { %v109_v36 = vmul.f32 %v108_v35, %v108_v35 }
 0x194   :  { %v110_v37 = vmin.f32 %v109_v36, 16.0 }
 0x195   :  { %v105_v38 = vpop.f32.mrf.mxu0 }
 0x196   :  { %v111_v39 = vmul.f32 2.1237322e-06, %v110_v37  ;;  %v122_v40 = vmul.f32 3.8918573e-05, %v110_v37 }
 0x198   :  { %v112_v41 = vadd.f32 0.00028619796, %v111_v39  ;;  %v123_v42 = vadd.f32 0.001143296, %v122_v40 }
 0x19a   :  { %v113_v43 = vmul.f32 %v112_v41, %v110_v37  ;;  %v124_v44 = vmul.f32 %v123_v42, %v110_v37  ;;  %v203_v41 = vld [vmem:[#allocation3] sm:$0xff] }
 0x19c   :  { %v125_v46 = vadd.f32 0.014752088, %v124_v44  ;;  %v114_v47 = vadd.f32 0.0036580483, %v113_v43 }
 0x19e   :  { %v126_v48 = vmul.f32 %v125_v46, %v110_v37  ;;  %v115_v50 = vmul.f32 %v114_v47, %v110_v37 }
 0x1a0   :  { %v127_v49 = vadd.f32 0.112945676, %v126_v48  ;;  %v116_v53 = vadd.f32 0.05243302, %v115_v50 }
 0x1a2   :  { %v128_v51 = vmul.f32 %v127_v49, %v110_v37  ;;  %v117_v56 = vmul.f32 %v116_v53, %v110_v37 }
 0x1a4   :  { %v129_v52 = vadd.f32 0.4994258, %v128_v51  ;;  %v118_v57 = vadd.f32 0.18741608, %v117_v56 }
 0x1a6   :  { %v130_v54 = vmul.f32 %v129_v52, %v110_v37  ;;  %v119_v59 = vmul.f32 %v118_v57, %v110_v37 }
 0x1a8   :  { %v131_v55 = vadd.f32 1.0, %v130_v54  ;;  %v120_v63 = vadd.f32 1.1283791, %v119_v59 }
 0x1aa   :  { %348 = vrcp.f32 %v131_v55  ;;  %v143_v62 = vand.u32 2147483648, %v131_v55  ;;  %v141_v2 = vand.u32 2147483647, %v131_v55  ;;  %vm137_vm6 = vweird.f32 %v131_v55 }
 0x1ab   :  { %v121_v5 = vmul.f32 %v120_v63, %v108_v35 }
 0x1ac   :  { %v144_v4 = vor.u32 1.1754944e-38, %v143_v62  ;;  %vm142_vm8 = vcmp.eq.f32.partialorder %v141_v2, 8.507059e+37  ;;  %v342_v62 = vld [vmem:[%s493_s2 + $0x4] ss:$0 sm:$0xff] }
 0x1b0   :  { %v349_v58 = vpop.eup %348 }
 0x1b1   :  { %v133_v60 = vmul.f32 %v349_v58, %v131_v55  ;;  %vm138_vm5 = vweird.f32 %v349_v58 }
 0x1b2   :  { %vm139_vm7 = vmor %vm137_vm6, %vm138_vm5 }
 0x1b3   :  { %v134_v61 = vsub.f32 1.0, %v133_v60 }
 0x1b5   :  { %v135_v1 = vmul.f32 %v349_v58, %v134_v61 }
 0x1b7   :  { %v136_v3 = vadd.f32 %v349_v58, %v135_v1 }
 0x1b9   :  { %v140_v6 = vsel %vm139_vm7, %v349_v58, %v136_v3 }
 0x1ba   :  { %v145_v7 = vsel %vm142_vm8, %v144_v4, %v140_v6 }
 0x1bb   :  { %v146_v9 = vmul.f32 %v145_v7, %v121_v5 }
 0x1bd   :  { %v313_v10 = vclamps-f32 %v146_v9, 1.0 }
 0x1bf   :  { %v149_v12 = vadd.f32 1.0, %v313_v10 }
 0x1c1   :  { %v150_v13 = vmul.f32 %v149_v12, %v107_v11 }
 0x1c3   :  { %v151_v14 = vpack.c.bf16 %v150_v13, %v150_v13 }
 0x1c5   :  { %318 = vmatmul.msk.bf16.vlgmr.msra.gmra.mxu1 %vm162_vm9, %v151_v14 }
 0x242   :  { %v175_v16 = vpop.f32.mrf.mxu1 }
 0x243   :  { %v176_v17 = vadd.f32 %v340_v15, %v175_v16 }
 0x245   :  { %v319_v18 = vmul.f32 -1.442695, %v176_v17 }
 0x247   :  { %350 = vpow2.f32 %v319_v18 }
 0x24a   :  { %v177_v21 = vpop.f32.mrf.mxu1 }
 0x24d   :  { %v351_v22 = vpop.eup %350 }
 0x24e   :  { %v182_v23 = vadd.f32 1.0, %v351_v22 }
 0x250   :  { %352 = vrcp.f32 %v182_v23  ;;  %v194_v29 = vand.u32 2147483648, %v182_v23  ;;  %v192_v31 = vand.u32 2147483647, %v182_v23  ;;  %vm188_vm11 = vweird.f32 %v182_v23 }
 0x252   :  { %v195_v34 = vor.u32 1.1754944e-38, %v194_v29  ;;  %vm193_vm13 = vcmp.eq.f32.partialorder %v192_v31, 8.507059e+37 }
 0x256   :  { %v353_v25 = vpop.eup %352 }
 0x257   :  { %v184_v26 = vmul.f32 %v353_v25, %v182_v23  ;;  %vm189_vm10 = vweird.f32 %v353_v25 }
 0x258   :  { %vm190_vm12 = vmor %vm188_vm11, %vm189_vm10 }
 0x259   :  { %v185_v27 = vsub.f32 1.0, %v184_v26 }
 0x25b   :  { %v186_v30 = vmul.f32 %v353_v25, %v185_v27 }
 0x25d   :  { %v187_v33 = vadd.f32 %v353_v25, %v186_v30 }
 0x25f   :  { %v191_v35 = vsel %vm190_vm12, %v353_v25, %v187_v33 }
 0x260   :  { %v196_v36 = vsel %vm193_vm13, %v195_v34, %v191_v35 }
 0x261   :  { %v199_v37 = vmul.f32 %v198_v32, %v196_v36 }
 0x263   :  { %v200_v38 = vadd.f32 %v199_v37, %v33_v28 }
 0x265   :  { %201 = vst.msk [vmem:[#allocation2] sm:$0xff] %vm34_vm0, %v200_v38 }
 0x26c   :  { %v206_v39 = vld [vmem:[#allocation2] sm:$0xff] }
 0x26d   :  { %v207_v40 = vpack.c.bf16 %v206_v39, %v206_v39 }
 0x26f   :  { %328 = vmatmul.msk.bf16.vlgmr.msra.gmra.mxu2 %vm34_vm0, %v207_v40 }
 0x2f2   :  { %v237_v42 = vpop.f32.mrf.mxu2 }
 0x2f3   :  { %v241_v43 = vadd.f32 %v237_v42, %v203_v41 }
 0x2f5   :  { %242 = vst.msk [vmem:[#allocation3] sm:$0xff] %vm34_vm0, %v241_v43 }
 0x2fa   :  { %v239_v44 = vpop.f32.mrf.mxu2 }
 0x2fc   :  { %v246_v45 = vld [vmem:[#allocation3] sm:$0xff] }
 0x2fd   :  { %v249_v46 = vadd.f32 %v341_v0, %v246_v45 }
 0x2ff   :  { %v250_v47 = vsel %vm34_vm0, %v249_v46, 0.0 }
 0x300   :  { %251 = vadd.xlane.f32.xlu1 %v250_v47 }
 0x373   :  { %v252_v48 = vpop.xlane.xlu1 %251 }
 0x374   :  { %v260_v49 = vmul.f32 %v252_v48, %v432_v8 }
 0x376   :  { %v261_v50 = vsub.f32 %v249_v46, %v260_v49 }
 0x378   :  { %v262_v51 = vmul.f32 %v261_v50, %v261_v50 }
 0x37a   :  { %v263_v52 = vsel %vm34_vm0, %v262_v51, 0.0 }
 0x37b   :  { %264 = vadd.xlane.f32.xlu1 %v263_v52 }
 0x3ee   :  { %v265_v53 = vpop.xlane.xlu1 %264 }
 0x3ef   :  { %v266_v54 = vmul.f32 %v265_v53, %v432_v8  ;;  %v343_v8 = vld [vmem:[%s493_s2 + $0x5] ss:$0 sm:$0xff] }
 0x3f1   :  { %v267_v55 = vadd.f32 1e-05, %v266_v54 }
 0x3f3   :  { %354 = vrsqrt.f32 %v267_v55  ;;  %vm274_vm15 = vweird.f32 %v267_v55 }
 0x3f9   :  { %v355_v56 = vpop.eup %354 }
 0x3fa   :  { %v269_v57 = vmul.f32 %v355_v56, %v267_v55  ;;  %vm275_vm14 = vweird.f32 %v355_v56 }
 0x3fb   :  { %vm276_vm1 = vmor %vm274_vm15, %vm275_vm14 }
 0x3fc   :  { %v270_v58 = vmul.f32 %v355_v56, %v269_v57 }
 0x3fe   :  { %v271_v59 = vmul.f32 0.5, %v270_v58 }
 0x400   :  { %v272_v60 = vsub.f32 1.5, %v271_v59 }
 0x402   :  { %v273_v61 = vmul.f32 %v355_v56, %v272_v60 }
 0x404   :  { %v277_v63 = vsel %vm276_vm1, %v355_v56, %v273_v61 }
 0x405   :  { %v278_v1 = vmul.f32 %v277_v63, %v261_v50 }
 0x407   :  { %v281_v2 = vmul.f32 %v342_v62, %v278_v1 }
 0x409   :  { %v284_v3 = vadd.f32 %v343_v8, %v281_v2 }
 0x40b   :  { %v286_v4 = vadd.f32 %v284_v3, %v206_v39 }
 0x40d   :  { %287 = vst.msk [vmem:[#allocation4] sm:$0xff] %vm34_vm0, %v286_v4 }
 0x40e   :  { %298 = dma.vmem_to_hbm [thread:$0]  %s294_s24, 128, %s296_s26, [#allocation5]  }
 0x40f   :  { %380 = dma.done.wait [#allocation5], 128  }
 0x410   :  { %381 = vsyncadd [#allocation5], 4294967168 }
 0x411   :  { %303 = vsyncpa [#allocation5], 1 }

</bundles_post_ra>
